<compile_context>
chip_gen: v5e
topology: v5e:2x2
jax: 0.10.0
libtpu: 0.0.40
codegen_flags: <defaults>
</compile_context>

<pallas_src>
import functools

import jax
import jax.numpy as jnp
from jax import lax
from jax.experimental import pallas as pl
from jax.experimental.pallas import tpu as pltpu


EMBEDDING_DIM = 50
H1, H2, H3, H_OUT = 128, 64, 32, 1
_VMEM_LIMIT_BYTES = 48 * 1024 * 1024   # headroom for tile_b sweeps up to ~8192


def _round_up(x, m):
    return ((x + m - 1) // m) * m


# --------------------------------------------------------------------------- #
# Kernel
# --------------------------------------------------------------------------- #
def _ncf_mlp_kernel(ue_ref, ae_ref,
                    w1u_ref, w1a_ref, b1_ref,
                    w2_ref, b2_ref,
                    w3_ref, b3_ref,
                    w4_ref, b4_ref,
                    o_ref):
    """Fused 4-layer MLP over one batch tile.

    ue_ref / ae_ref : (TB, D_PAD) embedding tiles (the concat is fused into
                      two dots against the split first-layer weight).
    o_ref           : (1, 1, TB) lane-dense slab of per-row scores.
    """
    f32 = jnp.float32
    hd = w2_ref.dtype                       # hidden-layer matmul dtype

    # layer 1: h = [ue, ae] @ w1 + b1   (split into two dots; K = 64 + 64)
    h = (jnp.dot(ue_ref[...], w1u_ref[...], preferred_element_type=f32)
         + jnp.dot(ae_ref[...], w1a_ref[...], preferred_element_type=f32)
         + b1_ref[...].astype(f32))
    h = jnp.maximum(h, 0.0)                 # ReLU  (Dropout(0.2) == id in eval)

    h = (jnp.dot(h.astype(hd), w2_ref[...], preferred_element_type=f32)
         + b2_ref[...].astype(f32))
    h = jnp.maximum(h, 0.0)                 # ReLU  (Dropout(0.2) == id in eval)

    h = (jnp.dot(h.astype(hd), w3_ref[...], preferred_element_type=f32)
         + b3_ref[...].astype(f32))
    h = jnp.maximum(h, 0.0)                 # ReLU

    # layer 4 (32 -> 1) as a transposed dot: (1,32) x (TB,32)^T -> (1,TB).
    # Per-row scalars come out lane-dense (no masked last-dim-1 stores).
    y = lax.dot_general(w4_ref[...], h.astype(hd),
                        dimension_numbers=(((1,), (1,)), ((), ())),
                        preferred_element_type=f32)
    y = y + b4_ref[...].astype(f32)         # (1, TB) + (1, 1)
    o_ref[...] = y.reshape(o_ref.shape).astype(o_ref.dtype)


# --------------------------------------------------------------------------- #
# pallas_call wrapper
# --------------------------------------------------------------------------- #
def _emb_spec(tile_b, d_pad, triple_buffer):
    index_map = lambda i: (i, 0)
    if triple_buffer:
        # Extra pipelining depth only pays off at small tiles (serving shapes).
        try:
            return pl.BlockSpec((tile_b, d_pad), index_map,
                                pipeline_mode=pl.Buffered(3))
        except TypeError:       # older jax without pipeline_mode kwarg
            pass
    return pl.BlockSpec((tile_b, d_pad), index_map)


def _ncf_mlp_pallas(ue, ae, weights, *, tile_b, triple_buffer_small_tiles=False):
    """ue/ae: (B_pad, D_PAD) with B_pad % tile_b == 0 and tile_b % 128 == 0."""
    (w1u, w1a, b1, w2, b2, w3, b3, w4, b4) = weights
    b_pad, d_pad = ue.shape
    assert b_pad % tile_b == 0 and tile_b % 128 == 0
    n_tiles = b_pad // tile_b

    full = lambda a: pl.BlockSpec(a.shape, lambda i: (0,) * a.ndim)
    emb_spec = _emb_spec(tile_b, d_pad,
                         triple_buffer_small_tiles and tile_b <= 1024)

    # Advisory cost estimate (helps XLA schedule the surrounding gathers).
    emb_itemsize = jnp.dtype(ue.dtype).itemsize
    w_bytes = sum(int(w.size) * jnp.dtype(w.dtype).itemsize for w in weights)
    cost = pl.CostEstimate(
        flops=2 * b_pad * (2 * d_pad * H1 + H1 * H2 + H2 * H3 + H3 * H_OUT),
        transcendentals=0,
        bytes_accessed=2 * b_pad * d_pad * emb_itemsize + 4 * b_pad + w_bytes)

    return pl.pallas_call(
        _ncf_mlp_kernel,
        out_shape=jax.ShapeDtypeStruct((n_tiles, 1, tile_b), jnp.float32),
        grid_spec=pltpu.PrefetchScalarGridSpec(
            num_scalar_prefetch=0,
            grid=(n_tiles,),
            in_specs=[
                emb_spec,                                   # user-emb tile
                emb_spec,                                   # anime-emb tile
                full(w1u), full(w1a), full(b1),
                full(w2), full(b2),
                full(w3), full(b3),
                full(w4), full(b4),
            ],
            out_specs=pl.BlockSpec((1, 1, tile_b), lambda i: (i, 0, 0)),
        ),
        compiler_params=pltpu.CompilerParams(
            dimension_semantics=("parallel",),
            vmem_limit_bytes=_VMEM_LIMIT_BYTES),
        cost_estimate=cost,
    )(ue, ae, w1u, w1a, b1, w2, b2, w3, b3, w4, b4)


# --------------------------------------------------------------------------- #
# Parameter construction / packing
# --------------------------------------------------------------------------- #
def init_ncf_params(key, num_users, num_animes, embedding_dim=EMBEDDING_DIM):
    """Logical params mirroring the PyTorch module (linear weights stored (in, out))."""
    keys = jax.random.split(key, 10)
    user_emb = jax.random.normal(keys[0], (num_users, embedding_dim), jnp.float32)
    anime_emb = jax.random.normal(keys[1], (num_animes, embedding_dim), jnp.float32)

    def linear(k_w, k_b, fan_in, fan_out):
        bound = 1.0 / float(fan_in) ** 0.5
        w = jax.random.uniform(k_w, (fan_in, fan_out), jnp.float32, -bound, bound)
        b = jax.random.uniform(k_b, (1, fan_out), jnp.float32, -bound, bound)
        return w, b

    fc = [
        linear(keys[2], keys[3], 2 * embedding_dim, H1),
        linear(keys[4], keys[5], H1, H2),
        linear(keys[6], keys[7], H2, H3),
        linear(keys[8], keys[9], H3, H_OUT),
    ]
    return user_emb, anime_emb, fc


def pack_ncf_params(user_emb, anime_emb, fc,
                    compute_dtype=jnp.bfloat16, hidden_dtype=None):
    """One-time repack into the kernel-friendly layout.

    * embedding tables lane-padded D -> D_PAD = round_up(D, 64),
    * w1 split into user/anime halves, each zero-padded to (D_PAD, 128),
    * w4 stored as a (1, 32) row,
    * `compute_dtype` (default bf16, MXU-native on v6e/v7x) applies to the
      HBM-streamed tables + first-layer weights; `hidden_dtype` (default =
      compute_dtype) applies to the small layer-2..4 weights.  On v5e pass
      hidden_dtype=jnp.float32 to skip in-kernel f32->bf16 activation casts.
    * biases kept in f32 (accumulation / elementwise stay f32 everywhere).
    """
    hidden_dtype = compute_dtype if hidden_dtype is None else hidden_dtype
    (w1, b1), (w2, b2), (w3, b3), (w4, b4) = fc
    d = user_emb.shape[1]
    d_pad = _round_up(d, 64)

    pad_cols = lambda a: jnp.pad(a, ((0, 0), (0, d_pad - a.shape[1])))
    pad_rows = lambda a: jnp.pad(a, ((0, d_pad - a.shape[0]), (0, 0)))

    ue_tab = pad_cols(user_emb).astype(compute_dtype)
    ae_tab = pad_cols(anime_emb).astype(compute_dtype)
    weights = (pad_rows(w1[:d]).astype(compute_dtype),       # w1 user half
               pad_rows(w1[d:]).astype(compute_dtype),       # w1 anime half
               b1.astype(jnp.float32),
               w2.astype(hidden_dtype), b2.astype(jnp.float32),
               w3.astype(hidden_dtype), b3.astype(jnp.float32),
               jnp.transpose(w4).astype(hidden_dtype),       # (1, 32)
               b4.astype(jnp.float32))                       # (1, 1)
    return ue_tab, ae_tab, weights


# --------------------------------------------------------------------------- #
# Forward
# --------------------------------------------------------------------------- #
def _choose_tile(b, tile_b):
    """Pick a 128-aligned batch tile; never over-pad tiny batches, and ensure
    >= 2 grid tiles for batches >= 256 so both v7x TensorCores get work."""
    b128 = _round_up(b, 128)
    tile = min(tile_b, b128)
    if b128 >= 256 and tile >= b128:
        tile = _round_up(b128 // 2, 128)
    return tile


@functools.partial(jax.jit,
                   static_argnames=("tile_b", "triple_buffer_small_tiles"))
def ncf_forward(user, anime, ue_tab, ae_tab, weights, *, tile_b=2048,
                triple_buffer_small_tiles=False):
    """Reproduces NCF.forward (eval mode) with the fused Pallas MLP."""
    assert tile_b % 128 == 0
    # PyTorch's .squeeze(0) is a no-op for 1-D index batches with B > 1;
    # we flatten the index inputs to (B,).
    user_idx = jnp.asarray(user, jnp.int32).reshape(-1)
    anime_idx = jnp.asarray(anime, jnp.int32).reshape(-1)
    b = user_idx.shape[0]

    tile = _choose_tile(b, tile_b)
    b_pad = _round_up(b, tile)

    # Pad the tiny index vectors (not the activations); the gathers then
    # produce the padded, kernel-ready activations directly.
    user_idx = jnp.pad(user_idx, (0, b_pad - b))
    anime_idx = jnp.pad(anime_idx, (0, b_pad - b))
    ue = jnp.take(ue_tab, user_idx, axis=0)        # (b_pad, D_PAD)
    ae = jnp.take(ae_tab, anime_idx, axis=0)       # (b_pad, D_PAD)

    out = _ncf_mlp_pallas(ue, ae, weights, tile_b=tile,
                          triple_buffer_small_tiles=triple_buffer_small_tiles)
    return out.reshape(-1)[:b].reshape(b, 1)


def _reference_forward(user, anime, user_emb, anime_emb, fc):
    """Pure-JAX reference on the unpadded, logical parameters."""
    ue = jnp.take(user_emb, jnp.asarray(user, jnp.int32).reshape(-1), axis=0)
    ae = jnp.take(anime_emb, jnp.asarray(anime, jnp.int32).reshape(-1), axis=0)
    h = jnp.concatenate((ue, ae), axis=1)
    (w1, b1), (w2, b2), (w3, b3), (w4, b4) = fc
    h = jnp.maximum(h @ w1 + b1, 0.0)
    h = jnp.maximum(h @ w2 + b2, 0.0)
    h = jnp.maximum(h @ w3 + b3, 0.0)
    return h @ w4 + b4


if __name__ == "__main__":
    key = jax.random.PRNGKey(0)
    num_users, num_animes = 32, 48

    k_params, k_u, k_a = jax.random.split(key, 3)
    user_emb, anime_emb, fc = init_ncf_params(k_params, num_users, num_animes)

    # --- f32 path, small batch (single tile) -------------------------------
    batch = 2
    user = jax.random.randint(k_u, (batch,), 0, num_users, dtype=jnp.int32)
    anime = jax.random.randint(k_a, (batch,), 0, num_animes, dtype=jnp.int32)

    ue32, ae32, w32 = pack_ncf_params(user_emb, anime_emb, fc,
                                      compute_dtype=jnp.float32)
    out = jax.block_until_ready(ncf_forward(user, anime, ue32, ae32, w32))
    ref = _reference_forward(user, anime, user_emb, anime_emb, fc)
    assert out.shape == (batch, 1), out.shape
    assert jnp.allclose(out, ref, atol=1e-5, rtol=1e-5), (out, ref)

    # --- f32 path, explicit small tile (grid of 3, batch padding) ----------
    batch2 = 300
    k_u2, k_a2 = jax.random.split(jax.random.PRNGKey(1))
    user2 = jax.random.randint(k_u2, (batch2,), 0, num_users, dtype=jnp.int32)
    anime2 = jax.random.randint(k_a2, (batch2,), 0, num_animes, dtype=jnp.int32)
    out2 = jax.block_until_ready(
        ncf_forward(user2, anime2, ue32, ae32, w32, tile_b=128))
    ref2 = _reference_forward(user2, anime2, user_emb, anime_emb, fc)
    assert out2.shape == (batch2, 1), out2.shape
    assert jnp.allclose(out2, ref2, atol=1e-5, rtol=1e-5)

    # --- f32 path, batch just at the 2-core split threshold ----------------
    batch3 = 256
    k_u3, k_a3 = jax.random.split(jax.random.PRNGKey(2))
    user3 = jax.random.randint(k_u3, (batch3,), 0, num_users, dtype=jnp.int32)
    anime3 = jax.random.randint(k_a3, (batch3,), 0, num_animes, dtype=jnp.int32)
    out3 = jax.block_until_ready(ncf_forward(user3, anime3, ue32, ae32, w32))
    ref3 = _reference_forward(user3, anime3, user_emb, anime_emb, fc)
    assert out3.shape == (batch3, 1), out3.shape
    assert jnp.allclose(out3, ref3, atol=1e-5, rtol=1e-5)

    # --- f32 path, large batch with the default 2048 tile (2 tiles) --------
    batch4 = 3000
    k_u4, k_a4 = jax.random.split(jax.random.PRNGKey(3))
    user4 = jax.random.randint(k_u4, (batch4,), 0, num_users, dtype=jnp.int32)
    anime4 = jax.random.randint(k_a4, (batch4,), 0, num_animes, dtype=jnp.int32)
    out4 = jax.block_until_ready(ncf_forward(user4, anime4, ue32, ae32, w32))
    ref4 = _reference_forward(user4, anime4, user_emb, anime_emb, fc)
    assert out4.shape == (batch4, 1), out4.shape
    assert jnp.allclose(out4, ref4, atol=1e-5, rtol=1e-5)

    # --- bf16 default path (recommended on v6e/v7x; f32 accumulation) ------
    ue16, ae16, w16 = pack_ncf_params(user_emb, anime_emb, fc)   # bf16 default
    out16 = jax.block_until_ready(ncf_forward(user, anime, ue16, ae16, w16))
    assert out16.shape == (batch, 1), out16.shape
    assert jnp.allclose(out16, ref, atol=0.15, rtol=0.1), (out16, ref)

    # --- bf16 streams + f32 hidden activations (v5e-friendly variant) ------
    ue5, ae5, w5 = pack_ncf_params(user_emb, anime_emb, fc,
                                   compute_dtype=jnp.bfloat16,
                                   hidden_dtype=jnp.float32)
    out5 = jax.block_until_ready(ncf_forward(user, anime, ue5, ae5, w5))
    assert out5.shape == (batch, 1), out5.shape
    assert jnp.allclose(out5, ref, atol=0.15, rtol=0.1), (out5, ref)

    print("KERNEL_OK")
</pallas_src>

<mosaic_0001>
module attributes {stable_mosaic.version = 11 : i64} {
  func.func @_ncf_mlp_kernel(%arg0: i32, %arg1: memref<128x64xf32, #tpu.memory_space<vmem>>, %arg2: memref<128x64xf32, #tpu.memory_space<vmem>>, %arg3: memref<64x128xf32, #tpu.memory_space<vmem>>, %arg4: memref<64x128xf32, #tpu.memory_space<vmem>>, %arg5: memref<1x128xf32, #tpu.memory_space<vmem>>, %arg6: memref<128x64xf32, #tpu.memory_space<vmem>>, %arg7: memref<1x64xf32, #tpu.memory_space<vmem>>, %arg8: memref<64x32xf32, #tpu.memory_space<vmem>>, %arg9: memref<1x32xf32, #tpu.memory_space<vmem>>, %arg10: memref<1x32xf32, #tpu.memory_space<vmem>>, %arg11: memref<1x1xf32, #tpu.memory_space<vmem>>, %arg12: memref<1x1x128xf32, #tpu.memory_space<vmem>>) attributes {dimension_semantics = [#tpu.dimension_semantics<parallel>], iteration_bounds = array<i64: 1>, scalar_prefetch = 0 : i64, scratch_operands = 0 : i64, tpu.core_type = #tpu.core_type<tc>, window_params = [{transform_indices = @transform_0, window_bounds = array<i64: 128, 64>}, {transform_indices = @transform_1, window_bounds = array<i64: 128, 64>}, {pipeline_mode = #tpu.pipeline_mode<synchronous>, transform_indices = @transform_2, window_bounds = array<i64: 64, 128>}, {pipeline_mode = #tpu.pipeline_mode<synchronous>, transform_indices = @transform_3, window_bounds = array<i64: 64, 128>}, {pipeline_mode = #tpu.pipeline_mode<synchronous>, transform_indices = @transform_4, window_bounds = array<i64: 1, 128>}, {pipeline_mode = #tpu.pipeline_mode<synchronous>, transform_indices = @transform_5, window_bounds = array<i64: 128, 64>}, {pipeline_mode = #tpu.pipeline_mode<synchronous>, transform_indices = @transform_6, window_bounds = array<i64: 1, 64>}, {pipeline_mode = #tpu.pipeline_mode<synchronous>, transform_indices = @transform_7, window_bounds = array<i64: 64, 32>}, {pipeline_mode = #tpu.pipeline_mode<synchronous>, transform_indices = @transform_8, window_bounds = array<i64: 1, 32>}, {pipeline_mode = #tpu.pipeline_mode<synchronous>, transform_indices = @transform_9, window_bounds = array<i64: 1, 32>}, {pipeline_mode = #tpu.pipeline_mode<synchronous>, transform_indices = @transform_10, window_bounds = array<i64: 1, 1>}, {transform_indices = @transform_11, window_bounds = array<i64: 1, 1, 128>}]} {
    %c0 = arith.constant 0 : index
    %c0_0 = arith.constant 0 : index
    %0 = vector.load %arg1[%c0, %c0_0] : memref<128x64xf32, #tpu.memory_space<vmem>>, vector<128x64xf32>
    %c0_1 = arith.constant 0 : index
    %c0_2 = arith.constant 0 : index
    %1 = vector.load %arg3[%c0_1, %c0_2] : memref<64x128xf32, #tpu.memory_space<vmem>>, vector<64x128xf32>
    %cst = arith.constant dense<0.000000e+00> : vector<128x128xf32>
    %2 = tpu.matmul %0, %1, %cst {dimension_numbers = #tpu.dot_dimension_numbers<[1], [0], [0], [1], [0, 0, 1, 1], [], []>} : vector<128x64xf32>, vector<64x128xf32>, vector<128x128xf32> -> vector<128x128xf32>
    %c0_3 = arith.constant 0 : index
    %c0_4 = arith.constant 0 : index
    %3 = vector.load %arg2[%c0_3, %c0_4] : memref<128x64xf32, #tpu.memory_space<vmem>>, vector<128x64xf32>
    %c0_5 = arith.constant 0 : index
    %c0_6 = arith.constant 0 : index
    %4 = vector.load %arg4[%c0_5, %c0_6] : memref<64x128xf32, #tpu.memory_space<vmem>>, vector<64x128xf32>
    %cst_7 = arith.constant dense<0.000000e+00> : vector<128x128xf32>
    %5 = tpu.matmul %3, %4, %cst_7 {dimension_numbers = #tpu.dot_dimension_numbers<[1], [0], [0], [1], [0, 0, 1, 1], [], []>} : vector<128x64xf32>, vector<64x128xf32>, vector<128x128xf32> -> vector<128x128xf32>
    %6 = arith.addf %2, %5 : vector<128x128xf32>
    %c0_8 = arith.constant 0 : index
    %c0_9 = arith.constant 0 : index
    %7 = vector.load %arg5[%c0_8, %c0_9] : memref<1x128xf32, #tpu.memory_space<vmem>>, vector<1x128xf32>
    %8 = vector.broadcast %7 : vector<1x128xf32> to vector<128x128xf32>
    %9 = arith.addf %6, %8 : vector<128x128xf32>
    %cst_10 = arith.constant 0.000000e+00 : f32
    %10 = vector.broadcast %cst_10 : f32 to vector<128x128xf32>
    %11 = arith.maximumf %9, %10 : vector<128x128xf32>
    %c0_11 = arith.constant 0 : index
    %c0_12 = arith.constant 0 : index
    %12 = vector.load %arg6[%c0_11, %c0_12] : memref<128x64xf32, #tpu.memory_space<vmem>>, vector<128x64xf32>
    %cst_13 = arith.constant dense<0.000000e+00> : vector<128x64xf32>
    %13 = tpu.matmul %11, %12, %cst_13 {dimension_numbers = #tpu.dot_dimension_numbers<[1], [0], [0], [1], [0, 0, 1, 1], [], []>} : vector<128x128xf32>, vector<128x64xf32>, vector<128x64xf32> -> vector<128x64xf32>
    %c0_14 = arith.constant 0 : index
    %c0_15 = arith.constant 0 : index
    %14 = vector.load %arg7[%c0_14, %c0_15] : memref<1x64xf32, #tpu.memory_space<vmem>>, vector<1x64xf32>
    %15 = vector.broadcast %14 : vector<1x64xf32> to vector<128x64xf32>
    %16 = arith.addf %13, %15 : vector<128x64xf32>
    %cst_16 = arith.constant 0.000000e+00 : f32
    %17 = vector.broadcast %cst_16 : f32 to vector<128x64xf32>
    %18 = arith.maximumf %16, %17 : vector<128x64xf32>
    %c0_17 = arith.constant 0 : index
    %c0_18 = arith.constant 0 : index
    %19 = vector.load %arg8[%c0_17, %c0_18] : memref<64x32xf32, #tpu.memory_space<vmem>>, vector<64x32xf32>
    %cst_19 = arith.constant dense<0.000000e+00> : vector<128x32xf32>
    %20 = tpu.matmul %18, %19, %cst_19 {dimension_numbers = #tpu.dot_dimension_numbers<[1], [0], [0], [1], [0, 0, 1, 1], [], []>} : vector<128x64xf32>, vector<64x32xf32>, vector<128x32xf32> -> vector<128x32xf32>
    %c0_20 = arith.constant 0 : index
    %c0_21 = arith.constant 0 : index
    %21 = vector.load %arg9[%c0_20, %c0_21] : memref<1x32xf32, #tpu.memory_space<vmem>>, vector<1x32xf32>
    %22 = vector.broadcast %21 : vector<1x32xf32> to vector<128x32xf32>
    %23 = arith.addf %20, %22 : vector<128x32xf32>
    %cst_22 = arith.constant 0.000000e+00 : f32
    %24 = vector.broadcast %cst_22 : f32 to vector<128x32xf32>
    %25 = arith.maximumf %23, %24 : vector<128x32xf32>
    %c0_23 = arith.constant 0 : index
    %c0_24 = arith.constant 0 : index
    %26 = vector.load %arg10[%c0_23, %c0_24] : memref<1x32xf32, #tpu.memory_space<vmem>>, vector<1x32xf32>
    %cst_25 = arith.constant dense<0.000000e+00> : vector<1x128xf32>
    %27 = tpu.matmul %26, %25, %cst_25 {dimension_numbers = #tpu.dot_dimension_numbers<[1], [1], [0], [0], [0, 0, 1, 0], [], []>} : vector<1x32xf32>, vector<128x32xf32>, vector<1x128xf32> -> vector<1x128xf32>
    %c0_26 = arith.constant 0 : index
    %c0_27 = arith.constant 0 : index
    %28 = vector.load %arg11[%c0_26, %c0_27] : memref<1x1xf32, #tpu.memory_space<vmem>>, vector<1x1xf32>
    %29 = vector.broadcast %28 : vector<1x1xf32> to vector<1x128xf32>
    %30 = arith.addf %27, %29 : vector<1x128xf32>
    %31 = vector.shape_cast %30 : vector<1x128xf32> to vector<1x1x128xf32>
    %c0_28 = arith.constant 0 : index
    %c0_29 = arith.constant 0 : index
    %c0_30 = arith.constant 0 : index
    %32 = vector.load %arg12[%c0_28, %c0_29, %c0_30] : memref<1x1x128xf32, #tpu.memory_space<vmem>>, vector<1x1x128xf32>
    tpu.vector_store %arg12[%c0_28, %c0_29, %c0_30], %31 {strides = array<i32>} : memref<1x1x128xf32, #tpu.memory_space<vmem>>, vector<1x1x128xf32>,
    return
  }
  func.func @transform_0(%arg0: i32) -> (i32, i32) {
    %c0_i32 = arith.constant 0 : i32
    %c0_i32_0 = arith.constant 0 : i32
    return %arg0, %c0_i32 : i32, i32
  }
  func.func @transform_1(%arg0: i32) -> (i32, i32) {
    %c0_i32 = arith.constant 0 : i32
    %c0_i32_0 = arith.constant 0 : i32
    return %arg0, %c0_i32 : i32, i32
  }
  func.func @transform_2(%arg0: i32) -> (i32, i32) {
    %c0_i32 = arith.constant 0 : i32
    %c0_i32_0 = arith.constant 0 : i32
    %c0_i32_1 = arith.constant 0 : i32
    return %c0_i32, %c0_i32_0 : i32, i32
  }
  func.func @transform_3(%arg0: i32) -> (i32, i32) {
    %c0_i32 = arith.constant 0 : i32
    %c0_i32_0 = arith.constant 0 : i32
    %c0_i32_1 = arith.constant 0 : i32
    return %c0_i32, %c0_i32_0 : i32, i32
  }
  func.func @transform_4(%arg0: i32) -> (i32, i32) {
    %c0_i32 = arith.constant 0 : i32
    %c0_i32_0 = arith.constant 0 : i32
    %c0_i32_1 = arith.constant 0 : i32
    return %c0_i32, %c0_i32_0 : i32, i32
  }
  func.func @transform_5(%arg0: i32) -> (i32, i32) {
    %c0_i32 = arith.constant 0 : i32
    %c0_i32_0 = arith.constant 0 : i32
    %c0_i32_1 = arith.constant 0 : i32
    return %c0_i32, %c0_i32_0 : i32, i32
  }
  func.func @transform_6(%arg0: i32) -> (i32, i32) {
    %c0_i32 = arith.constant 0 : i32
    %c0_i32_0 = arith.constant 0 : i32
    %c0_i32_1 = arith.constant 0 : i32
    return %c0_i32, %c0_i32_0 : i32, i32
  }
  func.func @transform_7(%arg0: i32) -> (i32, i32) {
    %c0_i32 = arith.constant 0 : i32
    %c0_i32_0 = arith.constant 0 : i32
    %c0_i32_1 = arith.constant 0 : i32
    return %c0_i32, %c0_i32_0 : i32, i32
  }
  func.func @transform_8(%arg0: i32) -> (i32, i32) {
    %c0_i32 = arith.constant 0 : i32
    %c0_i32_0 = arith.constant 0 : i32
    %c0_i32_1 = arith.constant 0 : i32
    return %c0_i32, %c0_i32_0 : i32, i32
  }
  func.func @transform_9(%arg0: i32) -> (i32, i32) {
    %c0_i32 = arith.constant 0 : i32
    %c0_i32_0 = arith.constant 0 : i32
    %c0_i32_1 = arith.constant 0 : i32
    return %c0_i32, %c0_i32_0 : i32, i32
  }
  func.func @transform_10(%arg0: i32) -> (i32, i32) {
    %c0_i32 = arith.constant 0 : i32
    %c0_i32_0 = arith.constant 0 : i32
    %c0_i32_1 = arith.constant 0 : i32
    return %c0_i32, %c0_i32_0 : i32, i32
  }
  func.func @transform_11(%arg0: i32) -> (i32, i32, i32) {
    %c0_i32 = arith.constant 0 : i32
    %c0_i32_0 = arith.constant 0 : i32
    %c0_i32_1 = arith.constant 0 : i32
    return %arg0, %c0_i32, %c0_i32_0 : i32, i32, i32
  }
}

</mosaic_0001>

<bundles_post_ra>
// kernel: ncf_forward.1
= control target key start
LH: loop header
LB: loop body
LE: loop exit
PB: predicated region body
PF: predicated region fallthrough
CT: control target
= control target key end

     0   :  { %vm88_vm0 = vcmask 523264   ;;  %vm601_vm1 = vcmask 261120   ;;  %s1166_s3 = inlined_call_operand.vmem [shape: f32[64,128], index: 3, kind: input, shape index: {}]   ;;  %s1167_s2 = inlined_call_operand.vmem [shape: f32[64,128], index: 2, kind: input, shape index: {}]   ;;  %s1168_s1 = inlined_call_operand.vmem [shape: f32[128,64], index: 1, kind: input, shape index: {}]   ;;  %s1169_s0 = inlined_call_operand.vmem [shape: f32[128,64], index: 0, kind: input, shape index: {}]   ;;  %s1170_s4 = inlined_call_operand.vmem [shape: f32[1,128], index: 4, kind: input, shape index: {}]   ;;  %s1171_s5 = inlined_call_operand.vmem [shape: f32[128,64], index: 5, kind: input, shape index: {}]   ;;  %s1172_s6 = inlined_call_operand.vmem [shape: f32[1,64], index: 6, kind: input, shape index: {}]   ;;  %s1173_s7 = inlined_call_operand.vmem [shape: f32[64,32], index: 7, kind: input, shape index: {}]   ;;  %s1174_s8 = inlined_call_operand.vmem [shape: f32[1,32], index: 8, kind: input, shape index: {}]   ;;  %s1175_s10 = inlined_call_operand.<no memory space> [shape: f32[1,1], index: 10, kind: input, shape index: {}]   ;;  %s1176_s9 = inlined_call_operand.vmem [shape: f32[1,32], index: 9, kind: input, shape index: {}]   ;;  %s1177_s11 = inlined_call_operand.vmem [shape: f32[1,1,128], index: 11, kind: output, shape index: {}]  }
   0x1   :  { %v87_v0 = vld [vmem:[%s1166_s3 + $0x38] sm:$0xff]  ;;  %v86_v2 = vld [vmem:[%s1166_s3 + $0x30] sm:$0xff]  ;;  %v85_v4 = vld [vmem:[%s1166_s3 + $0x28] sm:$0xff] }
   0x2   :  { %v63_v1 = vld [vmem:[%s1167_s2 + $0x38] sm:$0xff]  ;;  %145 = vmatpush.msra.mxu0 %v87_v0  ;;  %v62_v3 = vld [vmem:[%s1167_s2 + $0x30] sm:$0xff]  ;;  %v61_v5 = vld [vmem:[%s1167_s2 + $0x28] sm:$0xff] }
   0x3   :  { %258 = vmatpush.msra.mxu1 %v63_v1  ;;  %v84_v6 = vld [vmem:[%s1166_s3 + $0x20] sm:$0xff]  ;;  %v83_v8 = vld [vmem:[%s1166_s3 + $0x18] sm:$0xff]  ;;  %v82_v10 = vld [vmem:[%s1166_s3 + $0x10] sm:$0xff] }
   0x4   :  { %146 = vmatpush.msra.mxu0 %v86_v2  ;;  %v60_v7 = vld [vmem:[%s1167_s2 + $0x20] sm:$0xff]  ;;  %v59_v9 = vld [vmem:[%s1167_s2 + $0x18] sm:$0xff]  ;;  %v58_v11 = vld [vmem:[%s1167_s2 + $0x10] sm:$0xff] }
   0x5   :  { %259 = vmatpush.msra.mxu1 %v62_v3  ;;  %v81_v12 = vld [vmem:[%s1166_s3 + $0x8] sm:$0xff]  ;;  %v80_v14 = vld [vmem:[%s1166_s3] sm:$0xff]  ;;  %v66_v20 = vld [vmem:[%s1168_s1 + $0x10] sm:$0xff] }
   0x6   :  { %147 = vmatpush.msra.mxu0 %v85_v4  ;;  %v57_v13 = vld [vmem:[%s1167_s2 + $0x8] sm:$0xff]  ;;  %v56_v15 = vld [vmem:[%s1167_s2] sm:$0xff]  ;;  %v42_v21 = vld [vmem:[%s1169_s0 + $0x10] sm:$0xff] }
   0x7   :  { %260 = vmatpush.msra.mxu1 %v61_v5  ;;  %v64_v16 = vld [vmem:[%s1168_s1] sm:$0xff]  ;;  %v65_v18 = vld [vmem:[%s1168_s1 + $0x8] sm:$0xff]  ;;  %v67_v22 = vld [vmem:[%s1168_s1 + $0x18] sm:$0xff] }
   0x8   :  { %148 = vmatpush.msra.mxu0 %v84_v6  ;;  %v40_v17 = vld [vmem:[%s1169_s0] sm:$0xff]  ;;  %v41_v19 = vld [vmem:[%s1169_s0 + $0x8] sm:$0xff]  ;;  %v43_v23 = vld [vmem:[%s1169_s0 + $0x18] sm:$0xff] }
   0x9   :  { %261 = vmatpush.msra.mxu1 %v60_v7  ;;  %v68_v24 = vld [vmem:[%s1168_s1 + $0x20] sm:$0xff]  ;;  %v69_v26 = vld [vmem:[%s1168_s1 + $0x28] sm:$0xff]  ;;  %v366_v28 = vld [vmem:[%s1171_s5 + $0x78] sm:$0xff] }
   0xa   :  { %149 = vmatpush.msra.mxu0 %v83_v8  ;;  %v44_v25 = vld [vmem:[%s1169_s0 + $0x20] sm:$0xff]  ;;  %v45_v27 = vld [vmem:[%s1169_s0 + $0x28] sm:$0xff]  ;;  %743 = vmatpush.msra.mxu2 %v366_v28  ;;  %v70_v29 = vld [vmem:[%s1168_s1 + $0x30] sm:$0xff] }
   0xb   :  { %262 = vmatpush.msra.mxu1 %v59_v9  ;;  %v46_v30 = vld [vmem:[%s1169_s0 + $0x30] sm:$0xff]  ;;  %v71_v32 = vld [vmem:[%s1168_s1 + $0x38] sm:$0xff]  ;;  %v364_v34 = vld [vmem:[%s1171_s5 + $0x68] sm:$0xff] }
   0xc   :  { %150 = vmatpush.msra.mxu0 %v82_v10  ;;  %v365_v31 = vld [vmem:[%s1171_s5 + $0x70] sm:$0xff]  ;;  %v47_v33 = vld [vmem:[%s1169_s0 + $0x38] sm:$0xff]  ;;  %v72_v35 = vld [vmem:[%s1168_s1 + $0x40] sm:$0xff] }
   0xd   :  { %263 = vmatpush.msra.mxu1 %v58_v11  ;;  %744 = vmatpush.msra.mxu2 %v365_v31  ;;  %v48_v36 = vld [vmem:[%s1169_s0 + $0x40] sm:$0xff]  ;;  %v73_v38 = vld [vmem:[%s1168_s1 + $0x48] sm:$0xff]  ;;  %v362_v40 = vld [vmem:[%s1171_s5 + $0x58] sm:$0xff] }
   0xe   :  { %151 = vmatpush.msra.mxu0 %v81_v12  ;;  %v363_v37 = vld [vmem:[%s1171_s5 + $0x60] sm:$0xff]  ;;  %v49_v39 = vld [vmem:[%s1169_s0 + $0x48] sm:$0xff]  ;;  %v361_v41 = vld [vmem:[%s1171_s5 + $0x50] sm:$0xff] }
   0xf   :  { %264 = vmatpush.msra.mxu1 %v57_v13  ;;  %745 = vmatpush.msra.mxu2 %v364_v34  ;;  %v74_v42 = vld [vmem:[%s1168_s1 + $0x50] sm:$0xff]  ;;  %v360_v44 = vld [vmem:[%s1171_s5 + $0x48] sm:$0xff]  ;;  %v359_v45 = vld [vmem:[%s1171_s5 + $0x40] sm:$0xff] }
  0x10   :  { %152 = vmatpush.msra.mxu0 %v80_v14  ;;  %v50_v43 = vld [vmem:[%s1169_s0 + $0x50] sm:$0xff]  ;;  %v358_v46 = vld [vmem:[%s1171_s5 + $0x38] sm:$0xff]  ;;  %v356_v50 = vld [vmem:[%s1171_s5 + $0x28] sm:$0xff] }
  0x11   :  { %265 = vmatpush.msra.mxu1 %v56_v15  ;;  %678 = vmatmul.msk.f32.vlgmr.msra.gmra.mxu0 %vm88_vm0, %v64_v16  ;;  %v357_v47 = vld [vmem:[%s1171_s5 + $0x30] sm:$0xff]  ;;  %v75_v48 = vld [vmem:[%s1168_s1 + $0x58] sm:$0xff]  ;;  %v355_v51 = vld [vmem:[%s1171_s5 + $0x20] sm:$0xff] }
  0x12   :  { %694 = vmatmul.msk.f32.vlgmr.msra.gmra.mxu1 %vm88_vm0, %v40_v17  ;;  %746 = vmatpush.msra.mxu2 %v363_v37  ;;  %v51_v49 = vld [vmem:[%s1169_s0 + $0x58] sm:$0xff]  ;;  %v76_v53 = vld [vmem:[%s1168_s1 + $0x60] sm:$0xff]  ;;  %v353_v55 = vld [vmem:[%s1171_s5 + $0x10] sm:$0xff] }
  0x13   :  { %371 = vmatpush.msrb.mxu1 %v366_v28  ;;  %v354_v52 = vld [vmem:[%s1171_s5 + $0x18] sm:$0xff]  ;;  %v52_v54 = vld [vmem:[%s1169_s0 + $0x60] sm:$0xff]  ;;  %v352_v56 = vld [vmem:[%s1171_s5 + $0x8] sm:$0xff] }
  0x14   :  { %747 = vmatpush.msra.mxu2 %v362_v40  ;;  %v351_v57 = vld [vmem:[%s1171_s5] sm:$0xff]  ;;  %v77_v58 = vld [vmem:[%s1168_s1 + $0x68] sm:$0xff]  ;;  %v78_v60 = vld [vmem:[%s1168_s1 + $0x70] sm:$0xff] }
  0x15   :  { %372 = vmatpush.msrb.mxu1 %v365_v31  ;;  %v53_v59 = vld [vmem:[%s1169_s0 + $0x68] sm:$0xff]  ;;  %v54_v61 = vld [vmem:[%s1169_s0 + $0x70] sm:$0xff]  ;;  %v79_v62 = vld [vmem:[%s1168_s1 + $0x78] sm:$0xff] }
  0x16   :  { %748 = vmatpush.msra.mxu2 %v361_v41  ;;  %v55_v63 = vld [vmem:[%s1169_s0 + $0x78] sm:$0xff]  ;;  %v1052_v0 = vld [vmem:[%s1170_s4] ss:$0 sm:$0xff] }
  0x17   :  { %373 = vmatpush.msrb.mxu1 %v364_v34 }
  0x18   :  { %749 = vmatpush.msra.mxu2 %v360_v44 }
  0x19   :  { %679 = vmatmul.msk.f32.gmra.mxu0 %vm88_vm0, %v65_v18  ;;  %374 = vmatpush.msrb.mxu1 %v363_v37 }
  0x1a   :  { %695 = vmatmul.msk.f32.gmra.mxu1 %vm88_vm0, %v41_v19  ;;  %750 = vmatpush.msra.mxu2 %v359_v45 }
  0x1b   :  { %375 = vmatpush.msrb.mxu1 %v362_v40 }
  0x1c   :  { %751 = vmatpush.msra.mxu2 %v358_v46 }
  0x1d   :  { %376 = vmatpush.msrb.mxu1 %v361_v41 }
  0x1e   :  { %752 = vmatpush.msra.mxu2 %v357_v47 }
  0x1f   :  { %377 = vmatpush.msrb.mxu1 %v360_v44 }
  0x20   :  { %753 = vmatpush.msra.mxu2 %v356_v50 }
  0x21   :  { %680 = vmatmul.msk.f32.gmra.mxu0 %vm88_vm0, %v66_v20  ;;  %378 = vmatpush.msrb.mxu1 %v359_v45 }
  0x22   :  { %696 = vmatmul.msk.f32.gmra.mxu1 %vm88_vm0, %v42_v21  ;;  %754 = vmatpush.msra.mxu2 %v355_v51 }
  0x23   :  { %379 = vmatpush.msrb.mxu1 %v358_v46 }
  0x24   :  { %755 = vmatpush.msra.mxu2 %v354_v52 }
  0x25   :  { %380 = vmatpush.msrb.mxu1 %v357_v47 }
  0x26   :  { %756 = vmatpush.msra.mxu2 %v353_v55 }
  0x27   :  { %381 = vmatpush.msrb.mxu1 %v356_v50 }
  0x28   :  { %757 = vmatpush.msra.mxu2 %v352_v56 }
  0x29   :  { %681 = vmatmul.msk.f32.gmra.mxu0 %vm88_vm0, %v67_v22  ;;  %382 = vmatpush.msrb.mxu1 %v355_v51 }
  0x2a   :  { %697 = vmatmul.msk.f32.gmra.mxu1 %vm88_vm0, %v43_v23  ;;  %758 = vmatpush.msra.mxu2 %v351_v57 }
  0x2b   :  { %383 = vmatpush.msrb.mxu1 %v354_v52 }
  0x2d   :  { %384 = vmatpush.msrb.mxu1 %v353_v55 }
  0x2f   :  { %385 = vmatpush.msrb.mxu1 %v352_v56 }
  0x31   :  { %682 = vmatmul.msk.f32.gmra.mxu0 %vm88_vm0, %v68_v24  ;;  %386 = vmatpush.msrb.mxu1 %v351_v57 }
  0x32   :  { %698 = vmatmul.msk.f32.gmra.mxu1 %vm88_vm0, %v44_v25 }
  0x39   :  { %683 = vmatmul.msk.f32.gmra.mxu0 %vm88_vm0, %v69_v26 }
  0x3a   :  { %699 = vmatmul.msk.f32.gmra.mxu1 %vm88_vm0, %v45_v27 }
  0x41   :  { %684 = vmatmul.msk.f32.gmra.mxu0 %vm88_vm0, %v70_v29 }
  0x42   :  { %700 = vmatmul.msk.f32.gmra.mxu1 %vm88_vm0, %v46_v30 }
  0x49   :  { %685 = vmatmul.msk.f32.gmra.mxu0 %vm88_vm0, %v71_v32 }
  0x4a   :  { %701 = vmatmul.msk.f32.gmra.mxu1 %vm88_vm0, %v47_v33 }
  0x51   :  { %686 = vmatmul.msk.f32.gmra.mxu0 %vm88_vm0, %v72_v35 }
  0x52   :  { %702 = vmatmul.msk.f32.gmra.mxu1 %vm88_vm0, %v48_v36 }
  0x59   :  { %687 = vmatmul.msk.f32.gmra.mxu0 %vm88_vm0, %v73_v38 }
  0x5a   :  { %703 = vmatmul.msk.f32.gmra.mxu1 %vm88_vm0, %v49_v39 }
  0x61   :  { %688 = vmatmul.msk.f32.gmra.mxu0 %vm88_vm0, %v74_v42 }
  0x62   :  { %704 = vmatmul.msk.f32.gmra.mxu1 %vm88_vm0, %v50_v43 }
  0x69   :  { %689 = vmatmul.msk.f32.gmra.mxu0 %vm88_vm0, %v75_v48 }
  0x6a   :  { %705 = vmatmul.msk.f32.gmra.mxu1 %vm88_vm0, %v51_v49 }
  0x71   :  { %690 = vmatmul.msk.f32.gmra.mxu0 %vm88_vm0, %v76_v53 }
  0x72   :  { %706 = vmatmul.msk.f32.gmra.mxu1 %vm88_vm0, %v52_v54 }
  0x79   :  { %691 = vmatmul.msk.f32.gmra.mxu0 %vm88_vm0, %v77_v58 }
  0x7a   :  { %707 = vmatmul.msk.f32.gmra.mxu1 %vm88_vm0, %v53_v59  ;;  %v459_v59 = vld [vmem:[%s1173_s7 + $0x38] sm:$0xff] }
  0x7b   :  { %520 = vmatpush.msra.mxu3 %v459_v59 }
  0x81   :  { %692 = vmatmul.msk.f32.gmra.mxu0 %vm88_vm0, %v78_v60  ;;  %v458_v60 = vld [vmem:[%s1173_s7 + $0x30] sm:$0xff] }
  0x82   :  { %708 = vmatmul.msk.f32.gmra.mxu1 %vm88_vm0, %v54_v61  ;;  %521 = vmatpush.msra.mxu3 %v458_v60 }
  0x89   :  { %693 = vmatmul.msk.f32.gmra.mxu0 %vm88_vm0, %v79_v62  ;;  %v457_v62 = vld [vmem:[%s1173_s7 + $0x28] sm:$0xff] }
  0x8a   :  { %709 = vmatmul.msk.f32.gmra.mxu1 %vm88_vm0, %v55_v63  ;;  %522 = vmatpush.msra.mxu3 %v457_v62 }
  0x8e   :  { %v154_v1 = vpop.f32.mrf.mxu0 }
  0x8f   :  { %v267_v2 = vpop.f32.mrf.mxu1 }
  0x90   :  { %v268_v3 = vadd.f32 %v267_v2, %v154_v1  ;;  %v456_v1 = vld [vmem:[%s1173_s7 + $0x20] sm:$0xff]  ;;  %v455_v2 = vld [vmem:[%s1173_s7 + $0x18] sm:$0xff] }
  0x91   :  { %523 = vmatpush.msra.mxu3 %v456_v1 }
  0x92   :  { %v319_v4 = vadd.f32 %v1052_v0, %v268_v3 }
  0x93   :  { %524 = vmatpush.msra.mxu3 %v455_v2 }
  0x94   :  { %v335_v5 = vmax.f32 %v319_v4, 0.0 }
  0x96   :  { %387 = vmatmul.f32.vlgmr.msrb.gmra.mxu1 %v335_v5  ;;  %v157_v6 = vpop.f32.mrf.mxu0 }
  0x97   :  { %v270_v7 = vpop.f32.mrf.mxu1 }
  0x98   :  { %v271_v8 = vadd.f32 %v270_v7, %v157_v6  ;;  %v454_v7 = vld [vmem:[%s1173_s7 + $0x10] sm:$0xff] }
  0x99   :  { %525 = vmatpush.msra.mxu3 %v454_v7 }
  0x9a   :  { %v320_v9 = vadd.f32 %v1052_v0, %v271_v8 }
  0x9c   :  { %v336_v10 = vmax.f32 %v320_v9, 0.0  ;;  %v453_v9 = vld [vmem:[%s1173_s7 + $0x8] sm:$0xff] }
  0x9d   :  { %526 = vmatpush.msra.mxu3 %v453_v9 }
  0x9e   :  { %390 = vmatmul.f32.vlgmr.msra.gmra.mxu2 %v336_v10  ;;  %v160_v11 = vpop.f32.mrf.mxu0  ;;  %v452_v10 = vld [vmem:[%s1173_s7] sm:$0xff] }
  0x9f   :  { %v273_v12 = vpop.f32.mrf.mxu1  ;;  %527 = vmatpush.msra.mxu3 %v452_v10 }
  0xa0   :  { %v274_v13 = vadd.f32 %v273_v12, %v160_v11 }
  0xa2   :  { %v321_v14 = vadd.f32 %v1052_v0, %v274_v13 }
  0xa4   :  { %v337_v15 = vmax.f32 %v321_v14, 0.0 }
  0xa6   :  { %393 = vmatmul.f32.gmra.mxu2 %v337_v15  ;;  %v163_v16 = vpop.f32.mrf.mxu0 }
  0xa7   :  { %v276_v17 = vpop.f32.mrf.mxu1 }
  0xa8   :  { %v277_v18 = vadd.f32 %v276_v17, %v163_v16 }
  0xaa   :  { %v322_v19 = vadd.f32 %v1052_v0, %v277_v18 }
  0xac   :  { %v338_v20 = vmax.f32 %v322_v19, 0.0 }
  0xae   :  { %396 = vmatmul.f32.gmra.mxu2 %v338_v20  ;;  %v166_v21 = vpop.f32.mrf.mxu0 }
  0xaf   :  { %v279_v22 = vpop.f32.mrf.mxu1 }
  0xb0   :  { %v280_v23 = vadd.f32 %v279_v22, %v166_v21 }
  0xb2   :  { %v323_v24 = vadd.f32 %v1052_v0, %v280_v23 }
  0xb4   :  { %v339_v25 = vmax.f32 %v323_v24, 0.0 }
  0xb6   :  { %399 = vmatmul.f32.gmra.mxu2 %v339_v25  ;;  %v169_v26 = vpop.f32.mrf.mxu0 }
  0xb7   :  { %v282_v27 = vpop.f32.mrf.mxu1 }
  0xb8   :  { %v283_v28 = vadd.f32 %v282_v27, %v169_v26  ;;  %v1097_v26 = vld [vmem:[%s1172_s6] ss:$0 sm:$0xff] }
  0xba   :  { %v324_v29 = vadd.f32 %v1052_v0, %v283_v28 }
  0xbc   :  { %v340_v30 = vmax.f32 %v324_v29, 0.0 }
  0xbe   :  { %402 = vmatmul.f32.gmra.mxu2 %v340_v30  ;;  %v172_v31 = vpop.f32.mrf.mxu0 }
  0xbf   :  { %v285_v32 = vpop.f32.mrf.mxu1 }
  0xc0   :  { %v286_v33 = vadd.f32 %v285_v32, %v172_v31 }
  0xc2   :  { %v325_v34 = vadd.f32 %v1052_v0, %v286_v33 }
  0xc4   :  { %v341_v35 = vmax.f32 %v325_v34, 0.0 }
  0xc6   :  { %405 = vmatmul.f32.gmra.mxu2 %v341_v35  ;;  %v175_v36 = vpop.f32.mrf.mxu0 }
  0xc7   :  { %v288_v37 = vpop.f32.mrf.mxu1 }
  0xc8   :  { %v289_v38 = vadd.f32 %v288_v37, %v175_v36 }
  0xca   :  { %v326_v39 = vadd.f32 %v1052_v0, %v289_v38 }
  0xcc   :  { %v342_v40 = vmax.f32 %v326_v39, 0.0 }
  0xce   :  { %408 = vmatmul.f32.gmra.mxu2 %v342_v40  ;;  %v178_v41 = vpop.f32.mrf.mxu0 }
  0xcf   :  { %v291_v42 = vpop.f32.mrf.mxu1 }
  0xd0   :  { %v292_v43 = vadd.f32 %v291_v42, %v178_v41 }
  0xd2   :  { %v327_v44 = vadd.f32 %v1052_v0, %v292_v43 }
  0xd4   :  { %v343_v45 = vmax.f32 %v327_v44, 0.0 }
  0xd6   :  { %411 = vmatmul.f32.gmra.mxu2 %v343_v45  ;;  %v181_v46 = vpop.f32.mrf.mxu0 }
  0xd7   :  { %v294_v47 = vpop.f32.mrf.mxu1 }
  0xd8   :  { %v295_v48 = vadd.f32 %v294_v47, %v181_v46 }
  0xda   :  { %v328_v49 = vadd.f32 %v1052_v0, %v295_v48 }
  0xdc   :  { %v344_v50 = vmax.f32 %v328_v49, 0.0 }
  0xde   :  { %414 = vmatmul.f32.gmra.mxu2 %v344_v50  ;;  %v184_v51 = vpop.f32.mrf.mxu0 }
  0xdf   :  { %v297_v52 = vpop.f32.mrf.mxu1 }
  0xe0   :  { %v298_v53 = vadd.f32 %v297_v52, %v184_v51 }
  0xe2   :  { %v329_v54 = vadd.f32 %v1052_v0, %v298_v53 }
  0xe4   :  { %v345_v55 = vmax.f32 %v329_v54, 0.0 }
  0xe6   :  { %417 = vmatmul.f32.gmra.mxu2 %v345_v55  ;;  %v187_v56 = vpop.f32.mrf.mxu0 }
  0xe7   :  { %v300_v57 = vpop.f32.mrf.mxu1 }
  0xe8   :  { %v301_v58 = vadd.f32 %v300_v57, %v187_v56 }
  0xea   :  { %v330_v61 = vadd.f32 %v1052_v0, %v301_v58 }
  0xec   :  { %v346_v63 = vmax.f32 %v330_v61, 0.0 }
  0xee   :  { %420 = vmatmul.f32.gmra.mxu2 %v346_v63  ;;  %v190_v3 = vpop.f32.mrf.mxu0 }
  0xef   :  { %v303_v4 = vpop.f32.mrf.mxu1 }
  0xf0   :  { %v304_v5 = vadd.f32 %v303_v4, %v190_v3 }
  0xf2   :  { %v331_v6 = vadd.f32 %v1052_v0, %v304_v5 }
  0xf4   :  { %v347_v8 = vmax.f32 %v331_v6, 0.0 }
  0xf6   :  { %423 = vmatmul.f32.gmra.mxu2 %v347_v8  ;;  %v193_v11 = vpop.f32.mrf.mxu0 }
  0xf7   :  { %v306_v12 = vpop.f32.mrf.mxu1 }
  0xf8   :  { %v307_v13 = vadd.f32 %v306_v12, %v193_v11 }
  0xfa   :  { %v332_v14 = vadd.f32 %v1052_v0, %v307_v13 }
  0xfc   :  { %v348_v15 = vmax.f32 %v332_v14, 0.0 }
  0xfe   :  { %426 = vmatmul.f32.gmra.mxu2 %v348_v15  ;;  %v196_v16 = vpop.f32.mrf.mxu0 }
  0xff   :  { %v309_v17 = vpop.f32.mrf.mxu1 }
 0x100   :  { %v310_v18 = vadd.f32 %v309_v17, %v196_v16 }
 0x102   :  { %v333_v19 = vadd.f32 %v1052_v0, %v310_v18 }
 0x104   :  { %v349_v20 = vmax.f32 %v333_v19, 0.0 }
 0x106   :  { %429 = vmatmul.f32.gmra.mxu2 %v349_v20  ;;  %v199_v21 = vpop.f32.mrf.mxu0 }
 0x107   :  { %v312_v22 = vpop.f32.mrf.mxu1 }
 0x108   :  { %v313_v23 = vadd.f32 %v312_v22, %v199_v21 }
 0x10a   :  { %v334_v24 = vadd.f32 %v1052_v0, %v313_v23 }
 0x10c   :  { %v350_v25 = vmax.f32 %v334_v24, 0.0 }
 0x10e   :  { %432 = vmatmul.f32.gmra.mxu2 %v350_v25 }
 0x113   :  { %v388_v27 = vpop.f32.mrf.mxu1 }
 0x114   :  { %v389_v28 = vadd.f32 %v1097_v26, %v388_v27 }
 0x116   :  { %v436_v29 = vmax.f32 %v389_v28, 0.0 }
 0x118   :  { %710 = vmatmul.msk.f32.vlgmr.msra.gmra.mxu3 %vm88_vm0, %v436_v29 }
 0x121   :  { %v391_v30 = vpop.f32.mrf.mxu2 }
 0x122   :  { %v392_v31 = vadd.f32 %v1097_v26, %v391_v30 }
 0x124   :  { %v437_v32 = vmax.f32 %v392_v31, 0.0 }
 0x126   :  { %711 = vmatmul.msk.f32.gmra.mxu3 %vm88_vm0, %v437_v32 }
 0x129   :  { %v394_v0 = vpop.f32.mrf.mxu2 }
 0x12a   :  { %v395_v33 = vadd.f32 %v1097_v26, %v394_v0 }
 0x12c   :  { %v438_v34 = vmax.f32 %v395_v33, 0.0 }
 0x12e   :  { %712 = vmatmul.msk.f32.gmra.mxu3 %vm88_vm0, %v438_v34 }
 0x131   :  { %v397_v35 = vpop.f32.mrf.mxu2 }
 0x132   :  { %v398_v36 = vadd.f32 %v1097_v26, %v397_v35 }
 0x134   :  { %v439_v37 = vmax.f32 %v398_v36, 0.0 }
 0x136   :  { %713 = vmatmul.msk.f32.gmra.mxu3 %vm88_vm0, %v439_v37 }
 0x139   :  { %v400_v38 = vpop.f32.mrf.mxu2 }
 0x13a   :  { %v401_v39 = vadd.f32 %v1097_v26, %v400_v38 }
 0x13c   :  { %v440_v40 = vmax.f32 %v401_v39, 0.0 }
 0x13e   :  { %714 = vmatmul.msk.f32.gmra.mxu3 %vm88_vm0, %v440_v40 }
 0x141   :  { %v403_v41 = vpop.f32.mrf.mxu2 }
 0x142   :  { %v404_v42 = vadd.f32 %v1097_v26, %v403_v41 }
 0x144   :  { %v441_v43 = vmax.f32 %v404_v42, 0.0 }
 0x146   :  { %715 = vmatmul.msk.f32.gmra.mxu3 %vm88_vm0, %v441_v43 }
 0x149   :  { %v406_v44 = vpop.f32.mrf.mxu2 }
 0x14a   :  { %v407_v45 = vadd.f32 %v1097_v26, %v406_v44 }
 0x14c   :  { %v442_v46 = vmax.f32 %v407_v45, 0.0 }
 0x14e   :  { %716 = vmatmul.msk.f32.gmra.mxu3 %vm88_vm0, %v442_v46  ;;  %v16_v46 = vstv %s1175_s10 }
 0x14f   :  { %17 = vst [vmem:[#allocation2] sm:$0x1] %v16_v46 }
 0x151   :  { %v409_v47 = vpop.f32.mrf.mxu2 }
 0x152   :  { %v410_v48 = vadd.f32 %v1097_v26, %v409_v47  ;;  %v764_v47 = vmov 0  }
 0x153   :  { %760 = vset.pattern.permute.xlu0 %v764_v47 }
 0x154   :  { %v443_v49 = vmax.f32 %v410_v48, 0.0 }
 0x156   :  { %717 = vmatmul.msk.f32.gmra.mxu3 %vm88_vm0, %v443_v49 }
 0x159   :  { %v412_v50 = vpop.f32.mrf.mxu2 }
 0x15a   :  { %v413_v51 = vadd.f32 %v1097_v26, %v412_v50 }
 0x15c   :  { %v444_v52 = vmax.f32 %v413_v51, 0.0 }
 0x15e   :  { %718 = vmatmul.msk.f32.gmra.mxu3 %vm88_vm0, %v444_v52  ;;  %v594_v52 = vld [vmem:[#allocation2] sm:$0x1] }
 0x15f   :  { %597 = vperm.xlu0 %760, %v594_v52  }
 0x161   :  { %v415_v53 = vpop.f32.mrf.mxu2 }
 0x162   :  { %v416_v54 = vadd.f32 %v1097_v26, %v415_v53 }
 0x164   :  { %v445_v55 = vmax.f32 %v416_v54, 0.0 }
 0x166   :  { %719 = vmatmul.msk.f32.gmra.mxu3 %vm88_vm0, %v445_v55 }
 0x169   :  { %v418_v56 = vpop.f32.mrf.mxu2 }
 0x16a   :  { %v419_v57 = vadd.f32 %v1097_v26, %v418_v56 }
 0x16c   :  { %v446_v58 = vmax.f32 %v419_v57, 0.0 }
 0x16e   :  { %720 = vmatmul.msk.f32.gmra.mxu3 %vm88_vm0, %v446_v58 }
 0x171   :  { %v421_v59 = vpop.f32.mrf.mxu2 }
 0x172   :  { %v422_v60 = vadd.f32 %v1097_v26, %v421_v59 }
 0x174   :  { %v447_v61 = vmax.f32 %v422_v60, 0.0 }
 0x176   :  { %721 = vmatmul.msk.f32.gmra.mxu3 %vm88_vm0, %v447_v61 }
 0x179   :  { %v424_v62 = vpop.f32.mrf.mxu2 }
 0x17a   :  { %v425_v63 = vadd.f32 %v1097_v26, %v424_v62  ;;  %v593_v62 = vld [vmem:[%s1176_s9] sm:$0x1] }
 0x17c   :  { %v448_v1 = vmax.f32 %v425_v63, 0.0 }
 0x17e   :  { %722 = vmatmul.msk.f32.gmra.mxu3 %vm88_vm0, %v448_v1 }
 0x181   :  { %v427_v2 = vpop.f32.mrf.mxu2 }
 0x182   :  { %v428_v3 = vadd.f32 %v1097_v26, %v427_v2 }
 0x184   :  { %v449_v4 = vmax.f32 %v428_v3, 0.0 }
 0x186   :  { %723 = vmatmul.msk.f32.gmra.mxu3 %vm88_vm0, %v449_v4 }
 0x189   :  { %v430_v5 = vpop.f32.mrf.mxu2 }
 0x18a   :  { %v431_v6 = vadd.f32 %v1097_v26, %v430_v5 }
 0x18c   :  { %v450_v7 = vmax.f32 %v431_v6, 0.0 }
 0x18e   :  { %724 = vmatmul.msk.f32.gmra.mxu3 %vm88_vm0, %v450_v7 }
 0x191   :  { %v433_v8 = vpop.f32.mrf.mxu2 }
 0x192   :  { %v434_v9 = vadd.f32 %v1097_v26, %v433_v8  ;;  %v763_v26 = vld [vmem:[%s1174_s8] ss:$0 sm:$0xff] }
 0x194   :  { %v451_v10 = vmax.f32 %v434_v9, 0.0 }
 0x196   :  { %725 = vmatmul.msk.f32.gmra.mxu3 %vm88_vm0, %v451_v10 }
 0x19b   :  { %v1131_v11 = vpop.f32.mrf.mxu3 }
 0x19c   :  { %v530_v59 = vadd.f32 %v763_v26, %v1131_v11 }
 0x19e   :  { %v577_v61 = vmax.f32 %v530_v59, 0.0 }
 0x1a9   :  { %v1133_v12 = vpop.f32.mrf.mxu3 }
 0x1aa   :  { %v533_v57 = vadd.f32 %v763_v26, %v1133_v12 }
 0x1ac   :  { %v578_v60 = vmax.f32 %v533_v57, 0.0 }
 0x1b1   :  { %v535_v13 = vpop.f32.mrf.mxu3 }
 0x1b2   :  { %v536_v55 = vadd.f32 %v763_v26, %v535_v13 }
 0x1b4   :  { %v579_v58 = vmax.f32 %v536_v55, 0.0 }
 0x1b9   :  { %v538_v14 = vpop.f32.mrf.mxu3 }
 0x1ba   :  { %v539_v53 = vadd.f32 %v763_v26, %v538_v14 }
 0x1bc   :  { %v580_v56 = vmax.f32 %v539_v53, 0.0 }
 0x1c1   :  { %v541_v15 = vpop.f32.mrf.mxu3 }
 0x1c2   :  { %v542_v50 = vadd.f32 %v763_v26, %v541_v15 }
 0x1c4   :  { %v581_v54 = vmax.f32 %v542_v50, 0.0 }
 0x1c9   :  { %v544_v16 = vpop.f32.mrf.mxu3 }
 0x1ca   :  { %v545_v48 = vadd.f32 %v763_v26, %v544_v16 }
 0x1cc   :  { %v582_v51 = vmax.f32 %v545_v48, 0.0 }
 0x1d1   :  { %v547_v17 = vpop.f32.mrf.mxu3  ;;  %v598_v63 = vpop.permute.xlu0 %597 }
 0x1d2   :  { %v548_v44 = vadd.f32 %v763_v26, %v547_v17  ;;  %v600_v1 = vperm.slane %v598_v63, 0 }
 0x1d4   :  { %v583_v49 = vmax.f32 %v548_v44, 0.0 }
 0x1d9   :  { %v550_v18 = vpop.f32.mrf.mxu3 }
 0x1da   :  { %v551_v42 = vadd.f32 %v763_v26, %v550_v18 }
 0x1dc   :  { %v584_v45 = vmax.f32 %v551_v42, 0.0 }
 0x1e1   :  { %v553_v19 = vpop.f32.mrf.mxu3 }
 0x1e2   :  { %v554_v40 = vadd.f32 %v763_v26, %v553_v19 }
 0x1e4   :  { %v585_v43 = vmax.f32 %v554_v40, 0.0 }
 0x1e9   :  { %v556_v20 = vpop.f32.mrf.mxu3 }
 0x1ea   :  { %v557_v38 = vadd.f32 %v763_v26, %v556_v20 }
 0x1ec   :  { %v586_v41 = vmax.f32 %v557_v38, 0.0 }
 0x1f1   :  { %v559_v21 = vpop.f32.mrf.mxu3 }
 0x1f2   :  { %v560_v36 = vadd.f32 %v763_v26, %v559_v21 }
 0x1f4   :  { %v587_v39 = vmax.f32 %v560_v36, 0.0 }
 0x1f9   :  { %v562_v22 = vpop.f32.mrf.mxu3 }
 0x1fa   :  { %v563_v34 = vadd.f32 %v763_v26, %v562_v22 }
 0x1fc   :  { %v588_v37 = vmax.f32 %v563_v34, 0.0 }
 0x201   :  { %v565_v23 = vpop.f32.mrf.mxu3 }
 0x202   :  { %v566_v0 = vadd.f32 %v763_v26, %v565_v23 }
 0x204   :  { %v589_v35 = vmax.f32 %v566_v0, 0.0 }
 0x209   :  { %v568_v24 = vpop.f32.mrf.mxu3 }
 0x20a   :  { %v569_v31 = vadd.f32 %v763_v26, %v568_v24 }
 0x20c   :  { %v590_v33 = vmax.f32 %v569_v31, 0.0 }
 0x211   :  { %v571_v25 = vpop.f32.mrf.mxu3 }
 0x212   :  { %v572_v29 = vadd.f32 %v763_v26, %v571_v25 }
 0x214   :  { %v591_v32 = vmax.f32 %v572_v29, 0.0 }
 0x219   :  { %v574_v27 = vpop.f32.mrf.mxu3 }
 0x21a   :  { %v575_v28 = vadd.f32 %v763_v26, %v574_v27 }
 0x21c   :  { %v592_v30 = vmax.f32 %v575_v28, 0.0 }
 0x21e   :  { %726 = vmatpush.xpose.msk.msrb.mxu0 %vm601_vm1, %v592_v30 }
 0x222   :  { %727 = vmatpush.xpose.msk.msrb.mxu0 %vm601_vm1, %v591_v32 }
 0x226   :  { %728 = vmatpush.xpose.msk.msrb.mxu0 %vm601_vm1, %v590_v33 }
 0x22a   :  { %729 = vmatpush.xpose.msk.msrb.mxu0 %vm601_vm1, %v589_v35 }
 0x22e   :  { %730 = vmatpush.xpose.msk.msrb.mxu0 %vm601_vm1, %v588_v37 }
 0x232   :  { %731 = vmatpush.xpose.msk.msrb.mxu0 %vm601_vm1, %v587_v39 }
 0x236   :  { %732 = vmatpush.xpose.msk.msrb.mxu0 %vm601_vm1, %v586_v41 }
 0x23a   :  { %733 = vmatpush.xpose.msk.msrb.mxu0 %vm601_vm1, %v585_v43 }
 0x23e   :  { %734 = vmatpush.xpose.msk.msrb.mxu0 %vm601_vm1, %v584_v45 }
 0x242   :  { %735 = vmatpush.xpose.msk.msrb.mxu0 %vm601_vm1, %v583_v49 }
 0x246   :  { %736 = vmatpush.xpose.msk.msrb.mxu0 %vm601_vm1, %v582_v51 }
 0x24a   :  { %737 = vmatpush.xpose.msk.msrb.mxu0 %vm601_vm1, %v581_v54 }
 0x24e   :  { %738 = vmatpush.xpose.msk.msrb.mxu0 %vm601_vm1, %v580_v56 }
 0x252   :  { %739 = vmatpush.xpose.msk.msrb.mxu0 %vm601_vm1, %v579_v58 }
 0x256   :  { %740 = vmatpush.xpose.msk.msrb.mxu0 %vm601_vm1, %v578_v60 }
 0x25a   :  { %741 = vmatpush.xpose.msk.msrb.mxu0 %vm601_vm1, %v577_v61 }
 0x25d   :  { %742 = vmatmul.msk.f32.vlgmr.msrb.gmra.mxu0 %vm601_vm1, %v593_v62 }
 0x2da   :  { %v670_v2 = vpop.f32.mrf.mxu0 }
 0x2db   :  { %v671_v3 = vadd.f32 %v670_v2, %v600_v1 }
 0x2dd   :  { %673 = vst [vmem:[%s1177_s11] sm:$0x1] %v671_v3 }

</bundles_post_ra>
